<compile_context>
chip_gen: v7x
topology: tpu7x:2x2x1
jax: 0.10.0
libtpu: 0.0.40
codegen_flags: <defaults>
</compile_context>

<pallas_src>
import functools

import jax
import jax.numpy as jnp
from jax import lax
from jax.experimental import pallas as pl
from jax.experimental.pallas import tpu as pltpu


def _round_up(a, m):
    return (a + m - 1) // m * m


def _linear_kernel(x_ref, w_ref, b_ref, o_ref, *, pack):
    # x_ref: (bm_rows, Lp) VMEM    w_ref: (Lp, N_pad) VMEM (block-diagonal, zero-padded cols)
    # b_ref: (1,) SMEM             o_ref: (bm_rows, pack) VMEM
    acc = lax.dot_general(
        x_ref[...], w_ref[...],
        dimension_numbers=(((1,), (0,)), ((), ())),
        preferred_element_type=jnp.float32,
        precision=lax.Precision.HIGHEST,          # exact f32; MXU has full slack here
    )
    # Keep only the `pack` meaningful columns (lanes 0..pack-1: no relayout),
    # add the bias scalar on the VPU, store the small (bm_rows, pack) block.
    o_ref[...] = (acc[:, :pack] + b_ref[0]).astype(o_ref.dtype)


def linear_model_forward(x, weight, bias, *, bm=16384, use_pallas=None):
    """x: (B, D), weight: (1, D), bias: (1,)  ->  (B, 1), matching nn.Linear(D, 1)."""
    B, D = x.shape
    assert weight.shape == (1, D) and bias.shape == (1,)

    # At tiny batches the whole op is ~one vreg of work; kernel launch + wrapper
    # plumbing dwarf the math, so default to plain XLA there.
    if use_pallas is None:
        use_pallas = B >= 4096
    if not use_pallas:
        return x @ weight.T.astype(x.dtype) + bias.astype(x.dtype)

    # ---- pack `pack` source rows into one 128-lane row (free contiguous reshape) ----
    max_pack = 128 // D if (D <= 128 and 128 % D == 0) else 1
    pack = max_pack
    while pack > 1 and B % pack:
        pack //= 2                                  # fall back instead of padding all of x
    Lp = pack * D
    Bp = B // pack
    xp = x.reshape(Bp, Lp)

    # Block-diagonal weight: w_bd[j*D + d, j] = W[0, d]; pad columns to 128 for an
    # MXU-aligned RHS (zero columns are free -- MXU is otherwise idle).
    w_col = weight.reshape(D, 1).astype(x.dtype)
    w_bd = jnp.kron(jnp.eye(pack, dtype=x.dtype), w_col)          # (Lp, pack)
    n_pad = max(pack, 128)
    if n_pad > pack:
        w_bd = jnp.pad(w_bd, ((0, 0), (0, n_pad - pack)))         # (Lp, 128)

    # ---- tile sizing with lane-padded VMEM accounting ----
    itemsize = x.dtype.itemsize
    lanes_in = _round_up(Lp, 128)                 # x block minor dim, lane-padded
    lanes_out = _round_up(pack, 128)              # out block minor dim, lane-padded
    lanes_acc = _round_up(n_pad, 128)             # matmul result slab
    bytes_per_row = (2 * (lanes_in + lanes_out) + lanes_acc) * itemsize   # db in+out, 1x acc
    budget = 20 * 1024 * 1024
    cap_rows = max(128, (budget // bytes_per_row) // 128 * 128)

    if Bp <= 256:
        # Single tile; pad to a sublane multiple so the matmul M dim is aligned
        # (at most 7 extra rows of a tiny array -- negligible copy).
        Bp_eff = _round_up(Bp, 8)
        if Bp_eff != Bp:
            xp = jnp.pad(xp, ((0, Bp_eff - Bp), (0, 0)))
        bm_rows = Bp_eff
        grid_rows = 1
    else:
        Bp_eff = Bp
        req_rows = _round_up(max(bm // pack, 128), 128)
        two_tile_cap = _round_up(pl.cdiv(Bp, 2), 128)   # keep >= 2 tiles for v7x's 2 TCs
        bm_rows = max(128, min(req_rows, cap_rows, two_tile_cap))
        grid_rows = pl.cdiv(Bp_eff, bm_rows)            # ragged tail handled by clipped block

    vmem_need = (2 * bm_rows * (lanes_in + lanes_out) * itemsize   # double-buffered x + out
                 + bm_rows * lanes_acc * itemsize                  # matmul result slab
                 + 2 * _round_up(Lp, 8) * lanes_acc * itemsize     # resident weight (2 bufs)
                 + 4 * 1024 * 1024)                                # compiler headroom
    vmem_limit = int(min(max(vmem_need, 16 * 1024 * 1024), 48 * 1024 * 1024))

    out = pl.pallas_call(
        functools.partial(_linear_kernel, pack=pack),
        out_shape=jax.ShapeDtypeStruct((Bp_eff, pack), x.dtype),
        grid_spec=pltpu.PrefetchScalarGridSpec(
            num_scalar_prefetch=0,
            grid=(grid_rows,),
            in_specs=[
                pl.BlockSpec((bm_rows, Lp), lambda i: (i, 0)),          # packed x tile
                pl.BlockSpec((Lp, n_pad), lambda i: (0, 0)),            # weight (resident)
                pl.BlockSpec(memory_space=pltpu.MemorySpace.SMEM),      # bias scalar in SMEM
            ],
            out_specs=pl.BlockSpec((bm_rows, pack), lambda i: (i, 0)),
        ),
        compiler_params=pltpu.CompilerParams(
            dimension_semantics=("parallel",),     # v7x: both TCs split the batch tiles
            vmem_limit_bytes=vmem_limit,
        ),
    )(xp, w_bd, bias)

    # (Bp_eff, pack) rows are [b, b+1, ..] interleaved in order; flatten and trim padding.
    return out.reshape(-1)[:B].reshape(B, 1)


if __name__ == "__main__":
    # Small shapes implied by the module: LinearModel(input_shape=32), batch=8.
    B, D = 8, 32
    key = jax.random.PRNGKey(0)
    kx, kw, kb = jax.random.split(key, 3)
    x = jax.random.normal(kx, (B, D), dtype=jnp.float32)

    # Module-faithful parameters: init.zeros_(weight), init.zeros_(bias).
    w_zero = jnp.zeros((1, D), dtype=jnp.float32)
    b_zero = jnp.zeros((1,), dtype=jnp.float32)
    y_zero = jax.block_until_ready(linear_model_forward(x, w_zero, b_zero, use_pallas=True))
    assert y_zero.shape == (B, 1)
    assert jnp.allclose(y_zero, jnp.zeros((B, 1), jnp.float32), atol=1e-6)

    # Same forward math with non-trivial parameters through the Pallas path.
    w_rand = jax.random.normal(kw, (1, D), dtype=jnp.float32)
    b_rand = jax.random.normal(kb, (1,), dtype=jnp.float32)
    y_rand = jax.block_until_ready(linear_model_forward(x, w_rand, b_rand, use_pallas=True))
    y_ref = jnp.dot(x, w_rand.T, precision=lax.Precision.HIGHEST) + b_rand
    assert jnp.allclose(y_rand, y_ref, atol=1e-5, rtol=1e-5), "mismatch vs reference (B=8)"

    # A slightly larger, tile-unaligned batch exercises the packing/padding logic.
    B2 = 300
    x2 = jax.random.normal(kx, (B2, D), dtype=jnp.float32)
    y2 = jax.block_until_ready(linear_model_forward(x2, w_rand, b_rand, use_pallas=True))
    y2_ref = jnp.dot(x2, w_rand.T, precision=lax.Precision.HIGHEST) + b_rand
    assert jnp.allclose(y2, y2_ref, atol=1e-5, rtol=1e-5), "mismatch vs reference (B=300)"

    # Auto-gated path (tiny batch -> plain XLA) keeps module semantics too.
    y_auto = jax.block_until_ready(linear_model_forward(x, w_rand, b_rand))
    assert jnp.allclose(y_auto, y_ref, atol=1e-5, rtol=1e-5)

    print("KERNEL_OK")
</pallas_src>

<mosaic_0001>
module attributes {stable_mosaic.version = 11 : i64} {
  func.func @_linear_kernel(%arg0: i32, %arg1: memref<8x128xf32, #tpu.memory_space<vmem>>, %arg2: memref<128x128xf32, #tpu.memory_space<vmem>>, %arg3: memref<1xf32, #tpu.memory_space<smem>>, %arg4: memref<8x4xf32, #tpu.memory_space<vmem>>) attributes {dimension_semantics = [#tpu.dimension_semantics<parallel>], iteration_bounds = array<i64: 1>, scalar_prefetch = 0 : i64, scratch_operands = 0 : i64, tpu.core_type = #tpu.core_type<tc>, window_params = [{transform_indices = @transform_0, window_bounds = array<i64: 8, 128>}, {pipeline_mode = #tpu.pipeline_mode<synchronous>, transform_indices = @transform_1, window_bounds = array<i64: 128, 128>}, {transform_indices = @transform_2, window_bounds = array<i64: 1>}, {transform_indices = @transform_3, window_bounds = array<i64: 8, 4>}]} {
    %c0 = arith.constant 0 : index
    %c0_0 = arith.constant 0 : index
    %0 = vector.load %arg1[%c0, %c0_0] : memref<8x128xf32, #tpu.memory_space<vmem>>, vector<8x128xf32>
    %c0_1 = arith.constant 0 : index
    %c0_2 = arith.constant 0 : index
    %1 = vector.load %arg2[%c0_1, %c0_2] : memref<128x128xf32, #tpu.memory_space<vmem>>, vector<128x128xf32>
    %cst = arith.constant dense<0.000000e+00> : vector<8x128xf32>
    %2 = tpu.matmul %0, %1, %cst {dimension_numbers = #tpu.dot_dimension_numbers<[1], [0], [0], [1], [0, 0, 1, 1], [], []>, precision = #tpu.contract_precision<fp32>} : vector<8x128xf32>, vector<128x128xf32>, vector<8x128xf32> -> vector<8x128xf32>
    %3 = vector.extract_strided_slice %2 {offsets = [0, 0], sizes = [8, 4], strides = [1, 1]} : vector<8x128xf32> to vector<8x4xf32>
    %c0_3 = arith.constant 0 : index
    %4 = memref.load %arg3[%c0_3] : memref<1xf32, #tpu.memory_space<smem>>
    %5 = vector.broadcast %4 : f32 to vector<8x4xf32>
    %6 = arith.addf %3, %5 : vector<8x4xf32>
    %c0_4 = arith.constant 0 : index
    %c0_5 = arith.constant 0 : index
    %7 = vector.load %arg4[%c0_4, %c0_5] : memref<8x4xf32, #tpu.memory_space<vmem>>, vector<8x4xf32>
    tpu.vector_store %arg4[%c0_4, %c0_5], %6 {strides = array<i32>} : memref<8x4xf32, #tpu.memory_space<vmem>>, vector<8x4xf32>,
    return
  }
  func.func @transform_0(%arg0: i32) -> (i32, i32) {
    %c0_i32 = arith.constant 0 : i32
    %c0_i32_0 = arith.constant 0 : i32
    return %arg0, %c0_i32 : i32, i32
  }
  func.func @transform_1(%arg0: i32) -> (i32, i32) {
    %c0_i32 = arith.constant 0 : i32
    %c0_i32_0 = arith.constant 0 : i32
    %c0_i32_1 = arith.constant 0 : i32
    return %c0_i32, %c0_i32_0 : i32, i32
  }
  func.func @transform_2(%arg0: i32) -> i32 {
    %c0_i32 = arith.constant 0 : i32
    %c0_i32_0 = arith.constant 0 : i32
    return %c0_i32 : i32
  }
  func.func @transform_3(%arg0: i32) -> (i32, i32) {
    %c0_i32 = arith.constant 0 : i32
    %c0_i32_0 = arith.constant 0 : i32
    return %arg0, %c0_i32 : i32, i32
  }
}

</mosaic_0001>

<bundles_post_ra>
// kernel: tpu_custom_call.1
= control target key start
LH: loop header
LB: loop body
LE: loop exit
PB: predicated region body
PF: predicated region fallthrough
CT: control target
= control target key end

     0   :  { %9 = vsyncpa [#allocation4], 0  ;;  %s1544_s0 = inlined_call_operand.hbm [shape: f32[8,128], index: 0, kind: input, shape index: {}]   ;;  %s1545_s1 = inlined_call_operand.hbm [shape: f32[128,128], index: 1, kind: input, shape index: {}]   ;;  %s1546_s2 = inlined_call_operand.<no memory space> [shape: f32[1], index: 2, kind: input, shape index: {}]   ;;  %s1547_s3 = inlined_call_operand.vmem [shape: f32[8,4], index: 3, kind: output, shape index: {}]  }
   0x1   :  { %10 = vsyncpa [#allocation6], 0  ;;  %s1221_s12 = smov [#allocation3]   ;;  %s1222_s14 = smov [#allocation5]  }
   0x2   :  { %s17_s13 = sshll.u32 %s1221_s12, 4  ;;  %s26_s15 = sshll.u32 %s1222_s14, 4  ;;  %s18_s13 = int_to_ptr.vmem [resolvable:$true] %s17_s13  ;;  %s1248_s15 = int_to_ptr.vmem [resolvable:$true] %s26_s15 }
   0x3   :  { %s1173_s18 = scalar_lea.hbm %s1544_s0, 128 }
   0x4   :  { %p1174_p0 = scmp.ne.s32.totalorder %s1544_s0, %s1173_s18  ;;  %p1177_p1 = scmp.lt.u32.totalorder %s1173_s18, %s1544_s0 }
   0x6   :  { %p1179_p2 = pnand %p1177_p1, %p1174_p0 }
   0x8   :  { %1182 = shalt.err (!%p1179_p2)
}
   0x9   :  { %s1183_s23 = scalar_lea.vmem %s18_s13, 128  ;;  %p1188_p4 = scmp.lt.s32.totalorder %s18_s13, %s18_s13 }
   0xa   :  { %p1184_p3 = scmp.ne.s32.totalorder %s18_s13, %s1183_s23  ;;  %p1189_p5 = scmp.lt.s32.totalorder %s1183_s23, %s1183_s23 }
   0xc   :  { %p1190_p6 = por %p1189_p5, %p1188_p4 }
   0xe   :  { %p1191_p7 = pnand %p1190_p6, %p1184_p3 }
  0x10   :  { %1194 = shalt.err (!%p1191_p7)
}
  0x11   :  { %20 = dma.hbm_to_vmem [thread:$0]  %s1544_s0, 128, %s18_s13, [#allocation4]  }
  0x12   :  { %s1195_s28 = scalar_lea.hbm %s1545_s1, 2048 }
  0x13   :  { %p1196_p8 = scmp.ne.s32.totalorder %s1545_s1, %s1195_s28  ;;  %p1199_p9 = scmp.lt.u32.totalorder %s1195_s28, %s1545_s1 }
  0x15   :  { %p1201_p10 = pnand %p1199_p9, %p1196_p8 }
  0x17   :  { %1204 = shalt.err (!%p1201_p10)
}
  0x18   :  { %s1205_s6 = scalar_lea.vmem %s1248_s15, 2048  ;;  %p1210_p12 = scmp.lt.s32.totalorder %s1248_s15, %s1248_s15 }
  0x19   :  { %p1206_p11 = scmp.ne.s32.totalorder %s1248_s15, %s1205_s6  ;;  %p1211_p13 = scmp.lt.s32.totalorder %s1205_s6, %s1205_s6 }
  0x1b   :  { %p1212_p0 = por %p1211_p13, %p1210_p12 }
  0x1d   :  { %p1213_p1 = pnand %p1212_p0, %p1206_p11 }
  0x1f   :  { %1216 = shalt.err (!%p1213_p1)
}
  0x20   :  { %s1223_s0 = smov 128   ;;  %s1224_s7 = smov 8  }
  0x21   :  { %32 = dma.hbm_to_vmem [thread:$0]  %s1545_s1, 2048, %s1248_s15, [#allocation6], %s1223_s0, %s1223_s0, %s1224_s7  }
  0x22   :  { %1217 = dma.done.wait [#allocation4], 128  }
  0x23   :  { %1218 = vsyncadd [#allocation4], 4294967168 }
  0x24   :  { %1219 = dma.done.wait [#allocation6], 2048  }
  0x25   :  { %1220 = vsyncadd [#allocation6], 4294965248  ;;  %v1225_v0 = vmov 0.0|0.0   ;;  %vm1226_vm0 = vmmov 0   ;;  %v1227_v1 = vmov 0.0   ;;  %v42_v2 = vld [vmem:[#allocation5] sm:$0xff] }
  0x26   :  { %1022 = vmatprep.subr.bf16.mxu0 %v1225_v0  ;;  %1046 = vmatprep.subr.bf16.mxu1 %v1225_v0  ;;  %v43_v3 = vld [vmem:[#allocation5 + $0x8] sm:$0xff]  ;;  %v44_v4 = vld [vmem:[#allocation5 + $0x10] sm:$0xff]  ;;  %v59_v5 = vand.u32 4294901760, %v42_v2  ;;  %v45_v7 = vld [vmem:[#allocation5 + $0x18] sm:$0xff]  ;;  %vm702_vm1 = vcmask 31744  }
  0x27   :  { %844 = vmatprep.mubr.msk.f32.mxu0 %vm1226_vm0, %v1227_v1  ;;  %879 = vmatprep.mubr.msk.f32.mxu1 %vm1226_vm0, %v1227_v1  ;;  %v62_v6 = vand.u32 4294901760, %v43_v3  ;;  %v65_v8 = vand.u32 4294901760, %v44_v4  ;;  %v46_v9 = vld [vmem:[#allocation5 + $0x20] sm:$0xff]  ;;  %v47_v10 = vld [vmem:[#allocation5 + $0x28] sm:$0xff]  ;;  %v68_v11 = vand.u32 4294901760, %v45_v7  ;;  %v48_v14 = vld [vmem:[#allocation5 + $0x30] sm:$0xff] }
  0x28   :  { %v71_v12 = vand.u32 4294901760, %v46_v9  ;;  %v74_v13 = vand.u32 4294901760, %v47_v10  ;;  %v1287_v16 = vsub.f32 %v42_v2, %v59_v5  ;;  %v49_v19 = vld [vmem:[#allocation5 + $0x38] sm:$0xff]  ;;  %v50_v20 = vld [vmem:[#allocation5 + $0x40] sm:$0xff]  ;;  %v77_v26 = vand.u32 4294901760, %v48_v14  ;;  %v51_v27 = vld [vmem:[#allocation5 + $0x48] sm:$0xff] }
  0x29   :  { %v1285_v15 = vpack.c.bf16 %v62_v6, %v59_v5  ;;  %v1289_v17 = vsub.f32 %v43_v3, %v62_v6  ;;  %v1291_v18 = vsub.f32 %v44_v4, %v65_v8  ;;  %v1293_v21 = vpack.c.bf16 %v68_v11, %v65_v8  ;;  %v52_v40 = vld [vmem:[#allocation5 + $0x50] sm:$0xff]  ;;  %v53_v41 = vld [vmem:[#allocation5 + $0x58] sm:$0xff]  ;;  %v54_v50 = vld [vmem:[#allocation5 + $0x60] sm:$0xff] }
  0x2a   :  { %v1295_v22 = vsub.f32 %v45_v7, %v68_v11  ;;  %v1298_v23 = vsub.f32 %v46_v9, %v71_v12  ;;  %v152_v24 = vand.u32 4294901760, %v1287_v16  ;;  %v80_v28 = vand.u32 4294901760, %v49_v19  ;;  %v55_v59 = vld [vmem:[#allocation5 + $0x68] sm:$0xff]  ;;  %v56_v2 = vld [vmem:[#allocation5 + $0x70] sm:$0xff]  ;;  %v57_v7 = vld [vmem:[#allocation5 + $0x78] sm:$0xff] }
  0x2b   :  { %1024 = vmatpush3.bf16.msra.mxu0 %v1285_v15  ;;  %v159_v25 = vand.u32 4294901760, %v1289_v17  ;;  %v166_v29 = vand.u32 4294901760, %v1291_v18  ;;  %v83_v31 = vand.u32 4294901760, %v50_v20  ;;  %v1305_v32 = vsub.f32 %v47_v10, %v74_v13 }
  0x2c   :  { %1025 = vmatprep.subr.bf16.mxu0 %v1225_v0  ;;  %v173_v30 = vand.u32 4294901760, %v1295_v22  ;;  %v153_v33 = vsub.f32 %v1287_v16, %v152_v24  ;;  %v1313_v35 = vsub.f32 %v48_v14, %v77_v26  ;;  %v1315_v36 = vsub.f32 %v49_v19, %v80_v28 }
  0x2d   :  { %v160_v34 = vsub.f32 %v1289_v17, %v159_v25  ;;  %v167_v37 = vsub.f32 %v1291_v18, %v166_v29  ;;  %v86_v39 = vand.u32 4294901760, %v51_v27  ;;  %v1324_v42 = vpack.c.bf16 %v74_v13, %v71_v12 }
  0x2e   :  { %v174_v38 = vsub.f32 %v1295_v22, %v173_v30  ;;  %v154_v43 = vand.u32 4294901760, %v153_v33  ;;  %v1326_v45 = vpack.c.bf16 %v80_v28, %v77_v26  ;;  %v1329_v48 = vsub.f32 %v50_v20, %v83_v31 }
  0x2f   :  { %1027 = vmatpush3.bf16.msra.mxu0 %v1293_v21  ;;  %v161_v44 = vand.u32 4294901760, %v160_v34  ;;  %v168_v46 = vand.u32 4294901760, %v167_v37  ;;  %v180_v49 = vand.u32 4294901760, %v1298_v23  ;;  %v187_v52 = vand.u32 4294901760, %v1305_v32 }
  0x30   :  { %1028 = vmatprep.subr.bf16.mxu0 %v1225_v0  ;;  %v175_v47 = vand.u32 4294901760, %v174_v38  ;;  %v89_v53 = vand.u32 4294901760, %v52_v40  ;;  %v92_v54 = vand.u32 4294901760, %v53_v41  ;;  %v1333_v55 = vsub.f32 %v51_v27, %v86_v39 }
  0x31   :  { %v1047_v51 = vpack.c.bf16 %v161_v44, %v154_v43  ;;  %v181_v56 = vsub.f32 %v1298_v23, %v180_v49  ;;  %v194_v57 = vand.u32 4294901760, %v1313_v35  ;;  %v201_v58 = vand.u32 4294901760, %v1315_v36 }
  0x32   :  { %v1050_v60 = vpack.c.bf16 %v175_v47, %v168_v46  ;;  %v1341_v61 = vpack.c.bf16 %v86_v39, %v83_v31  ;;  %v188_v62 = vsub.f32 %v1305_v32, %v187_v52  ;;  %v95_v63 = vand.u32 4294901760, %v54_v50  ;;  %v41_v31 = vld [vmem:[#allocation3] sm:$0xff] }
  0x33   :  { %1030 = vmatpush3.bf16.msra.mxu0 %v1324_v42  ;;  %1048 = vmatpush3.bf16.msra.mxu1 %v1047_v51  ;;  %v182_v3 = vand.u32 4294901760, %v181_v56  ;;  %v1348_v4 = vsub.f32 %v52_v40, %v89_v53  ;;  %v195_v5 = vsub.f32 %v1313_v35, %v194_v57  ;;  %v202_v6 = vsub.f32 %v1315_v36, %v201_v58 }
  0x34   :  { %1031 = vmatprep.subr.bf16.mxu0 %v1225_v0  ;;  %1049 = vmatprep.subr.bf16.mxu1 %v1225_v0  ;;  %v189_v8 = vand.u32 4294901760, %v188_v62  ;;  %v1356_v9 = vsub.f32 %v53_v41, %v92_v54  ;;  %v98_v10 = vand.u32 4294901760, %v55_v59  ;;  %v208_v11 = vand.u32 4294901760, %v1329_v48 }
  0x35   :  { %v196_v12 = vand.u32 4294901760, %v195_v5  ;;  %v203_v13 = vand.u32 4294901760, %v202_v6  ;;  %v215_v14 = vand.u32 4294901760, %v1333_v55  ;;  %v101_v19 = vand.u32 4294901760, %v56_v2 }
  0x36   :  { %v1053_v20 = vpack.c.bf16 %v189_v8, %v182_v3  ;;  %v1361_v26 = vsub.f32 %v54_v50, %v95_v63  ;;  %v1363_v27 = vsub.f32 %v55_v59, %v98_v10  ;;  %v104_v28 = vand.u32 4294901760, %v57_v7 }
  0x37   :  { %1033 = vmatpush3.bf16.msra.mxu0 %v1326_v45  ;;  %1051 = vmatpush3.bf16.msra.mxu1 %v1050_v60  ;;  %v209_v33 = vsub.f32 %v1329_v48, %v208_v11  ;;  %v216_v34 = vsub.f32 %v1333_v55, %v215_v14  ;;  %v222_v37 = vand.u32 4294901760, %v1348_v4  ;;  %v1374_v38 = vpack.c.bf16 %v92_v54, %v89_v53 }
  0x38   :  { %1034 = vmatprep.subr.bf16.mxu0 %v1225_v0  ;;  %1052 = vmatprep.subr.bf16.mxu1 %v1225_v0  ;;  %v1056_v39 = vpack.c.bf16 %v203_v13, %v196_v12  ;;  %v1376_v40 = vsub.f32 %v56_v2, %v101_v19  ;;  %v229_v41 = vand.u32 4294901760, %v1356_v9  ;;  %v1382_v47 = vand.u32 4294901760, %v41_v31 }
  0x39   :  { %v210_v43 = vand.u32 4294901760, %v209_v33  ;;  %v217_v44 = vand.u32 4294901760, %v216_v34  ;;  %v223_v46 = vsub.f32 %v1348_v4, %v222_v37  ;;  %v1385_v50 = vsub.f32 %v57_v7, %v104_v28 }
  0x3a   :  { %v230_v51 = vsub.f32 %v1356_v9, %v229_v41  ;;  %v236_v53 = vand.u32 4294901760, %v1361_v26  ;;  %v243_v54 = vand.u32 4294901760, %v1363_v27  ;;  %v1395_v56 = vsub.f32 %v41_v31, %v1382_v47 }
  0x3b   :  { %1036 = vmatpush3.bf16.msra.mxu0 %v1341_v61  ;;  %1054 = vmatpush3.bf16.msra.mxu1 %v1053_v20  ;;  %v1397_v59 = vpack.c.bf16 %v98_v10, %v95_v63  ;;  %v1059_v60 = vpack.c.bf16 %v217_v44, %v210_v43  ;;  %v224_v62 = vand.u32 4294901760, %v223_v46  ;;  %v250_v3 = vand.u32 4294901760, %v1376_v40 }
  0x3c   :  { %1037 = vmatprep.subr.bf16.mxu0 %v1225_v0  ;;  %1055 = vmatprep.subr.bf16.mxu1 %v1225_v0  ;;  %v141_v2 = vand.u32 4294901760, %v1395_v56  ;;  %v231_v5 = vand.u32 4294901760, %v230_v51  ;;  %v237_v6 = vsub.f32 %v1361_v26, %v236_v53  ;;  %v244_v7 = vsub.f32 %v1363_v27, %v243_v54 }
  0x3d   :  { %v257_v63 = vand.u32 4294901760, %v1385_v50  ;;  %v1411_v8 = vpack.c.bf16 %v104_v28, %v101_v19  ;;  %v251_v12 = vsub.f32 %v1376_v40, %v250_v3  ;;  %v1071_v34 = vpack.c.bf16 %v1289_v17, %v1287_v16 }
  0x3e   :  { %v142_v10 = vsub.f32 %v1395_v56, %v141_v2  ;;  %v1062_v13 = vpack.c.bf16 %v231_v5, %v224_v62  ;;  %v238_v20 = vand.u32 4294901760, %v237_v6  ;;  %v245_v31 = vand.u32 4294901760, %v244_v7 }
  0x3f   :  { %1039 = vmatpush3.bf16.msra.mxu0 %v1374_v38  ;;  %1057 = vmatpush3.bf16.msra.mxu1 %v1056_v39  ;;  %v258_v33 = vsub.f32 %v1385_v50, %v257_v63  ;;  %v252_v39 = vand.u32 4294901760, %v251_v12  ;;  %v1074_v46 = vpack.c.bf16 %v1295_v22, %v1291_v18  ;;  %v1077_v51 = vpack.c.bf16 %v1305_v32, %v1298_v23 }
  0x40   :  { %1040 = vmatprep.subr.bf16.mxu0 %v1225_v0  ;;  %1058 = vmatprep.subr.bf16.mxu1 %v1225_v0  ;;  %v143_v19 = vand.u32 4294901760, %v142_v10  ;;  %v1065_v28 = vpack.c.bf16 %v245_v31, %v238_v20  ;;  %v1083_v62 = vpack.c.bf16 %v1333_v55, %v1329_v48  ;;  %v1086_v5 = vpack.c.bf16 %v1356_v9, %v1348_v4 }
  0x41   :  { %v259_v43 = vand.u32 4294901760, %v258_v33  ;;  %v1089_v6 = vpack.c.bf16 %v1363_v27, %v1361_v26  ;;  %v1092_v7 = vpack.c.bf16 %v1385_v50, %v1376_v40  ;;  %v1119_v10 = vpack.c.bf16 %v159_v25, %v152_v24 }
  0x42   :  { %v1122_v12 = vpack.c.bf16 %v173_v30, %v166_v29  ;;  %v1125_v16 = vpack.c.bf16 %v187_v52, %v180_v49  ;;  %v1128_v17 = vpack.c.bf16 %v201_v58, %v194_v57  ;;  %v1137_v18 = vpack.c.bf16 %v243_v54, %v236_v53 }
  0x43   :  { %1042 = vmatpush3.bf16.msra.mxu0 %v1397_v59  ;;  %1060 = vmatpush3.bf16.msra.mxu1 %v1059_v60  ;;  %v1068_v44 = vpack.c.bf16 %v259_v43, %v252_v39  ;;  %v1080_v60 = vpack.c.bf16 %v1315_v36, %v1313_v35 }
  0x44   :  { %1043 = vmatprep.subr.bf16.mxu0 %v1225_v0  ;;  %1061 = vmatprep.subr.bf16.mxu1 %v1225_v0 }
  0x47   :  { %1045 = vmatpush3.bf16.msra.mxu0 %v1411_v8  ;;  %1063 = vmatpush3.bf16.msra.mxu1 %v1062_v13 }
  0x48   :  { %1064 = vmatprep.subr.bf16.mxu1 %v1225_v0  ;;  %1070 = vmatprep.subr.bf16.mxu0 %v1225_v0 }
  0x4a   :  { %845 = vmatmul.mubr.f32.vlgmr.msra.gmra.mrb[0].mxu0 %v143_v19 }
  0x4b   :  { %1066 = vmatpush3.bf16.msra.mxu1 %v1065_v28  ;;  %1072 = vmatpush3.bf16.msra.mxu0 %v1071_v34 }
  0x4c   :  { %1067 = vmatprep.subr.bf16.mxu1 %v1225_v0  ;;  %1073 = vmatprep.subr.bf16.mxu0 %v1225_v0 }
  0x4d   :  { %914 = vmatprep.mubr.msk.f32.mxu0 %vm1226_vm0, %v1227_v1 }
  0x4f   :  { %1069 = vmatpush3.bf16.msra.mxu1 %v1068_v44  ;;  %1075 = vmatpush3.bf16.msra.mxu0 %v1074_v46 }
  0x50   :  { %1076 = vmatprep.subr.bf16.mxu0 %v1225_v0  ;;  %1094 = vmatprep.subr.bf16.mxu1 %v1225_v0 }
  0x52   :  { %880 = vmatmul.mubr.f32.vlgmr.msra.gmra.mrb[0].mxu1 %v1382_v47 }
  0x53   :  { %1078 = vmatpush3.bf16.msra.mxu0 %v1077_v51  ;;  %1096 = vmatpush3.bf16.msra.mxu1 %v1285_v15 }
  0x54   :  { %1079 = vmatprep.subr.bf16.mxu0 %v1225_v0  ;;  %1097 = vmatprep.subr.bf16.mxu1 %v1225_v0 }
  0x55   :  { %949 = vmatprep.mubr.msk.f32.mxu1 %vm1226_vm0, %v1227_v1 }
  0x57   :  { %1081 = vmatpush3.bf16.msra.mxu0 %v1080_v60  ;;  %1099 = vmatpush3.bf16.msra.mxu1 %v1293_v21 }
  0x58   :  { %1082 = vmatprep.subr.bf16.mxu0 %v1225_v0  ;;  %1100 = vmatprep.subr.bf16.mxu1 %v1225_v0 }
  0x5b   :  { %1084 = vmatpush3.bf16.msra.mxu0 %v1083_v62  ;;  %1102 = vmatpush3.bf16.msra.mxu1 %v1324_v42 }
  0x5c   :  { %1085 = vmatprep.subr.bf16.mxu0 %v1225_v0  ;;  %1103 = vmatprep.subr.bf16.mxu1 %v1225_v0 }
  0x5f   :  { %1087 = vmatpush3.bf16.msra.mxu0 %v1086_v5  ;;  %1105 = vmatpush3.bf16.msra.mxu1 %v1326_v45 }
  0x60   :  { %1088 = vmatprep.subr.bf16.mxu0 %v1225_v0  ;;  %1106 = vmatprep.subr.bf16.mxu1 %v1225_v0 }
  0x63   :  { %1090 = vmatpush3.bf16.msra.mxu0 %v1089_v6  ;;  %1108 = vmatpush3.bf16.msra.mxu1 %v1341_v61 }
  0x64   :  { %1091 = vmatprep.subr.bf16.mxu0 %v1225_v0  ;;  %1109 = vmatprep.subr.bf16.mxu1 %v1225_v0 }
  0x67   :  { %1093 = vmatpush3.bf16.msra.mxu0 %v1092_v7  ;;  %1111 = vmatpush3.bf16.msra.mxu1 %v1374_v38 }
  0x68   :  { %1112 = vmatprep.subr.bf16.mxu1 %v1225_v0  ;;  %1118 = vmatprep.subr.bf16.mxu0 %v1225_v0 }
  0x6a   :  { %915 = vmatmul.mubr.f32.vlgmr.msra.gmra.mrb[2].mxu0 %v1395_v56 }
  0x6b   :  { %1114 = vmatpush3.bf16.msra.mxu1 %v1397_v59  ;;  %1120 = vmatpush3.bf16.msra.mxu0 %v1119_v10 }
  0x6c   :  { %1115 = vmatprep.subr.bf16.mxu1 %v1225_v0  ;;  %1121 = vmatprep.subr.bf16.mxu0 %v1225_v0 }
  0x6d   :  { %984 = vmatprep.mubr.msk.f32.mxu0 %vm1226_vm0, %v1227_v1 }
  0x6f   :  { %1117 = vmatpush3.bf16.msra.mxu1 %v1411_v8  ;;  %1123 = vmatpush3.bf16.msra.mxu0 %v1122_v12 }
  0x70   :  { %1124 = vmatprep.subr.bf16.mxu0 %v1225_v0  ;;  %1142 = vmatprep.subr.bf16.mxu1 %v1225_v0 }
  0x72   :  { %950 = vmatmul.mubr.f32.vlgmr.msra.gmra.mrb[2].mxu1 %v141_v2 }
  0x73   :  { %1126 = vmatpush3.bf16.msra.mxu0 %v1125_v16  ;;  %1144 = vmatpush3.bf16.msra.mxu1 %v1285_v15  ;;  %v1131_v15 = vpack.c.bf16 %v215_v14, %v208_v11 }
  0x74   :  { %1127 = vmatprep.subr.bf16.mxu0 %v1225_v0  ;;  %1145 = vmatprep.subr.bf16.mxu1 %v1225_v0 }
  0x75   :  { %1019 = vmatprep.mubr.msk.f32.mxu1 %vm1226_vm0, %v1227_v1  ;;  %v1134_v1 = vpack.c.bf16 %v229_v41, %v222_v37 }
  0x77   :  { %1129 = vmatpush3.bf16.msra.mxu0 %v1128_v17  ;;  %1147 = vmatpush3.bf16.msra.mxu1 %v1293_v21  ;;  %v1140_v21 = vpack.c.bf16 %v257_v63, %v250_v3 }
  0x78   :  { %1130 = vmatprep.subr.bf16.mxu0 %v1225_v0  ;;  %1148 = vmatprep.subr.bf16.mxu1 %v1225_v0 }
  0x7b   :  { %1132 = vmatpush3.bf16.msra.mxu0 %v1131_v15  ;;  %1150 = vmatpush3.bf16.msra.mxu1 %v1324_v42 }
  0x7c   :  { %1133 = vmatprep.subr.bf16.mxu0 %v1225_v0  ;;  %1151 = vmatprep.subr.bf16.mxu1 %v1225_v0 }
  0x7f   :  { %1135 = vmatpush3.bf16.msra.mxu0 %v1134_v1  ;;  %1153 = vmatpush3.bf16.msra.mxu1 %v1326_v45 }
  0x80   :  { %1136 = vmatprep.subr.bf16.mxu0 %v1225_v0  ;;  %1154 = vmatprep.subr.bf16.mxu1 %v1225_v0 }
  0x83   :  { %1138 = vmatpush3.bf16.msra.mxu0 %v1137_v18  ;;  %1156 = vmatpush3.bf16.msra.mxu1 %v1341_v61 }
  0x84   :  { %1139 = vmatprep.subr.bf16.mxu0 %v1225_v0  ;;  %1157 = vmatprep.subr.bf16.mxu1 %v1225_v0 }
  0x87   :  { %1141 = vmatpush3.bf16.msra.mxu0 %v1140_v21  ;;  %1159 = vmatpush3.bf16.msra.mxu1 %v1374_v38 }
  0x88   :  { %1160 = vmatprep.subr.bf16.mxu1 %v1225_v0 }
  0x8a   :  { %985 = vmatmul.mubr.f32.vlgmr.msra.gmra.mrb[4].mxu0 %v1382_v47 }
  0x8b   :  { %1162 = vmatpush3.bf16.msra.mxu1 %v1397_v59 }
  0x8c   :  { %1163 = vmatprep.subr.bf16.mxu1 %v1225_v0  ;;  %v700_v0 = vstv %s1546_s2 }
  0x8f   :  { %1165 = vmatpush3.bf16.msra.mxu1 %v1411_v8 }
  0x92   :  { %1020 = vmatmul.mubr.f32.vlgmr.msra.gmra.mrb[4].mxu1 %v1382_v47 }
 0x11d   :  { %v145_v22 = vpop.f32.mrb[0].mxu0 }
 0x11e   :  { %v846_v23 = vpop.f32.mrb[1].mxu0 }
 0x125   :  { %v296_v24 = vpop.f32.mrb[0].mxu1 }
 0x126   :  { %v297_v25 = vadd.f32 %v296_v24, %v145_v22  ;;  %v881_v29 = vpop.f32.mrb[1].mxu1 }
 0x13d   :  { %v400_v30 = vpop.f32.mrb[2].mxu0 }
 0x13e   :  { %v401_v32 = vadd.f32 %v400_v30, %v297_v25  ;;  %v916_v35 = vpop.f32.mrb[3].mxu0 }
 0x145   :  { %v489_v36 = vpop.f32.mrb[2].mxu1 }
 0x146   :  { %v490_v42 = vadd.f32 %v489_v36, %v401_v32  ;;  %v951_v45 = vpop.f32.mrb[3].mxu1 }
 0x15d   :  { %v608_v48 = vpop.f32.mrb[4].mxu0 }
 0x15e   :  { %v609_v49 = vadd.f32 %v608_v48, %v490_v42  ;;  %v986_v52 = vpop.f32.mrb[5].mxu0 }
 0x165   :  { %v695_v55 = vpop.f32.mrb[4].mxu1 }
 0x166   :  { %v696_v57 = vadd.f32 %v695_v55, %v609_v49  ;;  %v1021_v58 = vpop.f32.mrb[5].mxu1 }
 0x168   :  { %v701_v61 = vadd.f32 %v700_v0, %v696_v57 }
 0x16a   :  { %703 = vst.msk [vmem:[%s1547_s3] sm:$0xff] %vm702_vm1, %v701_v61 }
 0x16b   :  { %708 = vsyncpa [#allocation4], 1 }
 0x16c   :  { %709 = vsyncpa [#allocation6], 1 }

</bundles_post_ra>
